<compile_context>
chip_gen: v5e
topology: v5e:2x2
jax: 0.10.0
libtpu: 0.0.40
codegen_flags: <defaults>
</compile_context>

<pallas_src>
import math

import jax
import jax.numpy as jnp
import numpy as np
from jax.experimental import pallas as pl
from jax.experimental.pallas import tpu as pltpu

_VMEM_LIMIT = 32 * 1024 * 1024  # safe on v5e/v6e/v7x; raises v5e's 16 MiB default


# ----------------------------- Pallas kernels ------------------------------


def _make_qkv_proj_kernel(E, compute_dtype):
    """Fused q/k/v in-projection: x(tm,E) @ W_in(3E,E)^T + b, split into 3 outs."""

    def kernel(x_ref, w_ref, b_ref, q_ref, k_ref, v_ref):
        x = x_ref[...].astype(compute_dtype)  # loaded once, reused for q/k/v
        for idx, o_ref in enumerate((q_ref, k_ref, v_ref)):
            w = w_ref[idx * E:(idx + 1) * E, :].astype(compute_dtype)  # (E, E)
            b = b_ref[:, idx * E:(idx + 1) * E]                        # (1, E)
            acc = jax.lax.dot_general(
                x, w, (((1,), (1,)), ((), ())),
                preferred_element_type=jnp.float32)                   # (tm, E)
            o_ref[...] = (acc + b).astype(o_ref.dtype)

    return kernel


def _make_linear_kernel(compute_dtype):
    """Generic x(tm,K) @ W(Eout,K)^T + b (used on non-self-attention paths)."""

    def kernel(x_ref, w_ref, b_ref, o_ref):
        acc = jax.lax.dot_general(
            x_ref[...].astype(compute_dtype), w_ref[...].astype(compute_dtype),
            (((1,), (1,)), ((), ())), preferred_element_type=jnp.float32)
        o_ref[...] = (acc + b_ref[...]).astype(o_ref.dtype)

    return kernel


def _make_attn_outproj_kernel(H, scaling, compute_dtype):
    """Per-batch-element attention over all H heads + fused out-projection.

    q_ref: (T, E), k_ref/v_ref: (S, E), wo_ref: (E, E), bo_ref: (1, E)
    o_ref: (T, E) row-slab of the (B*T, E) output
    w_ref: (1, T, S) head-averaged attention weights for this batch element
    """

    def kernel(q_ref, k_ref, v_ref, wo_ref, bo_ref, o_ref, w_ref):
        T, E = q_ref.shape
        S = k_ref.shape[0]
        Dh = E // H

        q = (q_ref[...] * scaling).astype(compute_dtype)  # scale folded in-kernel
        k = k_ref[...].astype(compute_dtype)
        v = v_ref[...].astype(compute_dtype)

        head_outs = []
        w_sum = jnp.zeros((T, S), jnp.float32)
        for h in range(H):  # static unroll; H is small
            lo, hi = h * Dh, (h + 1) * Dh
            # scores_h = q_h @ k_h^T  (contract over Dh)
            s = jax.lax.dot_general(
                q[:, lo:hi], k[:, lo:hi], (((1,), (1,)), ((), ())),
                preferred_element_type=jnp.float32)                    # (T, S)
            # fp32 softmax over the last dim (matches F.softmax(..., dim=-1))
            s = s - jnp.max(s, axis=-1, keepdims=True)
            e = jnp.exp(s)
            # approx=True routes to the EUP approx reciprocal (cheaper) when the
            # accuracy budget allows; kept exact here for the tight test check.
            inv = pl.reciprocal(jnp.sum(e, axis=-1, keepdims=True), approx=False)
            p = e * inv                                                # (T, S)
            w_sum = w_sum + p
            head_outs.append(
                jnp.dot(p.astype(compute_dtype), v[:, lo:hi],
                        preferred_element_type=jnp.float32))           # (T, Dh)

        attn = jnp.concatenate(head_outs, axis=1)                      # (T, E)

        # fused out-projection: attn @ W_out^T + b_out
        out = jax.lax.dot_general(
            attn.astype(compute_dtype), wo_ref[...].astype(compute_dtype),
            (((1,), (1,)), ((), ())), preferred_element_type=jnp.float32)
        o_ref[...] = (out + bo_ref[...]).astype(o_ref.dtype)
        w_ref[0] = (w_sum * (1.0 / H)).astype(w_ref.dtype)

    return kernel


# ------------------------------ wrappers ------------------------------------


def _row_tile(n, target=256):
    """Row-tile size: full array if small, else 256 (multiple of 8)."""
    return n if n <= target else target


def pallas_qkv_proj(x, w_in, b_in, compute_dtype):
    """x: (N, E), w_in: (3E, E), b_in: (3E,) -> q, k, v each (N, E)."""
    N, E = x.shape
    tm = _row_tile(N)
    return pl.pallas_call(
        _make_qkv_proj_kernel(E, compute_dtype),
        out_shape=tuple(jax.ShapeDtypeStruct((N, E), x.dtype) for _ in range(3)),
        grid=(pl.cdiv(N, tm),),
        in_specs=[
            pl.BlockSpec((tm, E), lambda i: (i, 0)),        # x row slab (streamed)
            pl.BlockSpec((3 * E, E), lambda i: (0, 0)),     # full W_in (resident)
            pl.BlockSpec((1, 3 * E), lambda i: (0, 0)),     # full bias (resident)
        ],
        out_specs=tuple(pl.BlockSpec((tm, E), lambda i: (i, 0)) for _ in range(3)),
        compiler_params=pltpu.CompilerParams(
            dimension_semantics=("parallel",), vmem_limit_bytes=_VMEM_LIMIT),
    )(x, w_in, b_in.reshape(1, 3 * E))


def pallas_linear(x, w, b, compute_dtype):
    """x: (N, K), w: (Eout, K), b: (Eout,) -> (N, Eout)   (F.linear)."""
    N, K = x.shape
    Eout = w.shape[0]
    tm = _row_tile(N)
    return pl.pallas_call(
        _make_linear_kernel(compute_dtype),
        out_shape=jax.ShapeDtypeStruct((N, Eout), x.dtype),
        grid=(pl.cdiv(N, tm),),
        in_specs=[
            pl.BlockSpec((tm, K), lambda i: (i, 0)),
            pl.BlockSpec((Eout, K), lambda i: (0, 0)),
            pl.BlockSpec((1, Eout), lambda i: (0, 0)),
        ],
        out_specs=pl.BlockSpec((tm, Eout), lambda i: (i, 0)),
        compiler_params=pltpu.CompilerParams(
            dimension_semantics=("parallel",), vmem_limit_bytes=_VMEM_LIMIT),
    )(x, w, b.reshape(1, Eout))


def pallas_attention_outproj(q, k, v, w_out, b_out, B, T, S, H, compute_dtype):
    """q: (B*T, E), k/v: (B*S, E), batch-major rows.

    Returns out (B*T, E) (already out-projected) and head-averaged weights
    (B, T, S)."""
    E = q.shape[1]
    scaling = (E // H) ** (-0.5)
    return pl.pallas_call(
        _make_attn_outproj_kernel(H, scaling, compute_dtype),
        out_shape=(
            jax.ShapeDtypeStruct((B * T, E), q.dtype),
            jax.ShapeDtypeStruct((B, T, S), jnp.float32),
        ),
        grid=(B,),
        in_specs=[
            pl.BlockSpec((T, E), lambda b: (b, 0)),      # q rows of batch b
            pl.BlockSpec((S, E), lambda b: (b, 0)),      # k rows of batch b
            pl.BlockSpec((S, E), lambda b: (b, 0)),      # v rows of batch b
            pl.BlockSpec((E, E), lambda b: (0, 0)),      # W_out (resident)
            pl.BlockSpec((1, E), lambda b: (0, 0)),      # b_out (resident)
        ],
        out_specs=(
            pl.BlockSpec((T, E), lambda b: (b, 0)),
            pl.BlockSpec((1, T, S), lambda b: (b, 0, 0)),
        ),
        compiler_params=pltpu.CompilerParams(
            dimension_semantics=("parallel",), vmem_limit_bytes=_VMEM_LIMIT),
    )(q, k, v, w_out, b_out.reshape(1, E))


def multihead_attention_forward(query, key, value, params, num_heads,
                                compute_dtype=jnp.float32):
    """Forward pass matching MultiheadAttention.forward (attn_dropout=0,
    add_bias_kv=False, add_zero_attn=False).

    Note: T and S should be multiples of 8 (sublane tiling) for the per-batch
    row-slab BlockSpecs used here; the test shapes satisfy this.
    """
    T, B, E = query.shape
    S = key.shape[0]
    H = num_heads

    w_in, b_in = params["in_proj_weight"], params["in_proj_bias"]
    w_out, b_out = params["out_proj_weight"], params["out_proj_bias"]

    # Single up-front layout change: (T, B, E) -> batch-major rows (B*L, E),
    # so every kernel below addresses contiguous per-batch row slabs.
    def to_rows(x, L):
        return x.transpose(1, 0, 2).reshape(B * L, E)

    xq = to_rows(query, T)
    qkv_same = (key is query) and (value is query)
    kv_same = (value is key)

    if qkv_same:
        # self-attention: one fused projection, x read from HBM once.
        q, k, v = pallas_qkv_proj(xq, w_in, b_in, compute_dtype)
    elif kv_same:
        # TODO(synk): fuse the k/v projections for the kv_same path as well.
        xk = to_rows(key, S)
        q = pallas_linear(xq, w_in[:E], b_in[:E], compute_dtype)
        k = pallas_linear(xk, w_in[E:2 * E], b_in[E:2 * E], compute_dtype)
        v = pallas_linear(xk, w_in[2 * E:], b_in[2 * E:], compute_dtype)
    else:
        xk = to_rows(key, S)
        xv = to_rows(value, S)
        q = pallas_linear(xq, w_in[:E], b_in[:E], compute_dtype)
        k = pallas_linear(xk, w_in[E:2 * E], b_in[E:2 * E], compute_dtype)
        v = pallas_linear(xv, w_in[2 * E:], b_in[2 * E:], compute_dtype)

    out_rows, attn_weights = pallas_attention_outproj(
        q, k, v, w_out, b_out, B, T, S, H, compute_dtype)

    out = out_rows.reshape(B, T, E).transpose(1, 0, 2)  # -> (T, B, E)
    return out, attn_weights  # (T, B, E), (B, T, S)


# --------------------------- parameter init ---------------------------------


def init_params(key, embed_dim):
    """Deterministic xavier-uniform init (same distributions as reset_parameters)."""
    k1, k2 = jax.random.split(key, 2)
    a_in = math.sqrt(6.0 / (embed_dim + 3 * embed_dim))
    in_proj_weight = jax.random.uniform(
        k1, (3 * embed_dim, embed_dim), jnp.float32, -a_in, a_in)
    a_out = math.sqrt(6.0 / (embed_dim + embed_dim))
    out_proj_weight = jax.random.uniform(
        k2, (embed_dim, embed_dim), jnp.float32, -a_out, a_out)
    return {
        "in_proj_weight": in_proj_weight,
        "in_proj_bias": jnp.zeros((3 * embed_dim,), jnp.float32),
        "out_proj_weight": out_proj_weight,
        "out_proj_bias": jnp.zeros((embed_dim,), jnp.float32),
    }


# ------------------------------ reference -----------------------------------


def reference_forward(query, key, value, params, num_heads):
    """Pure-JAX reference mirroring the PyTorch module exactly (self-attn)."""
    T, B, E = query.shape
    S = key.shape[0]
    H = num_heads
    Dh = E // H
    scaling = Dh ** (-0.5)
    w_in, b_in = params["in_proj_weight"], params["in_proj_bias"]
    w_out, b_out = params["out_proj_weight"], params["out_proj_bias"]

    qkv = jnp.einsum("tbe,fe->tbf", query, w_in) + b_in
    q, k, v = jnp.split(qkv, 3, axis=-1)
    q = q * scaling
    q = q.reshape(T, B * H, Dh).transpose(1, 0, 2)
    k = k.reshape(S, B * H, Dh).transpose(1, 0, 2)
    v = v.reshape(S, B * H, Dh).transpose(1, 0, 2)
    w = jnp.einsum("ntd,nsd->nts", q, k)
    w = jax.nn.softmax(w.astype(jnp.float32), axis=-1)
    attn = jnp.einsum("nts,nsd->ntd", w, v)
    attn = attn.transpose(1, 0, 2).reshape(T, B, E)
    attn = jnp.einsum("tbe,fe->tbf", attn, w_out) + b_out
    w = w.reshape(B, H, T, S).sum(axis=1) / H
    return attn, w


# -------------------------------- main ---------------------------------------


if __name__ == "__main__":
    T, B, E, H = 8, 2, 32, 4  # seq=8, batch=2, embed=32, heads=4 (head_dim=8)

    root = jax.random.PRNGKey(0)
    k_x, k_p = jax.random.split(root)
    x = jax.random.normal(k_x, (T, B, E), jnp.float32)  # layout: (T, B, E)
    params = init_params(k_p, E)

    # self-attention: query == key == value (qkv_same branch, fused projection)
    attn, attn_weights = multihead_attention_forward(x, x, x, params, H)
    attn = jax.block_until_ready(attn)
    attn_weights = jax.block_until_ready(attn_weights)

    assert attn.shape == (T, B, E)
    assert attn_weights.shape == (B, T, T)
    assert not bool(jnp.any(jnp.isnan(attn)))  # mirrors the module's nan check

    ref_attn, ref_w = reference_forward(x, x, x, params, H)
    np.testing.assert_allclose(np.asarray(attn), np.asarray(ref_attn),
                               rtol=1e-4, atol=1e-5)
    np.testing.assert_allclose(np.asarray(attn_weights), np.asarray(ref_w),
                               rtol=1e-4, atol=1e-5)

    print("KERNEL_OK")
</pallas_src>

<mosaic_0001>
module attributes {stable_mosaic.version = 11 : i64} {
  func.func @kernel(%arg0: i32, %arg1: memref<16x32xf32, #tpu.memory_space<vmem>>, %arg2: memref<96x32xf32, #tpu.memory_space<vmem>>, %arg3: memref<1x96xf32, #tpu.memory_space<vmem>>, %arg4: memref<16x32xf32, #tpu.memory_space<vmem>>, %arg5: memref<16x32xf32, #tpu.memory_space<vmem>>, %arg6: memref<16x32xf32, #tpu.memory_space<vmem>>) attributes {dimension_semantics = [#tpu.dimension_semantics<parallel>], iteration_bounds = array<i64: 1>, scalar_prefetch = 0 : i64, scratch_operands = 0 : i64, tpu.core_type = #tpu.core_type<tc>, window_params = [{transform_indices = @transform_0, window_bounds = array<i64: 16, 32>}, {pipeline_mode = #tpu.pipeline_mode<synchronous>, transform_indices = @transform_1, window_bounds = array<i64: 96, 32>}, {pipeline_mode = #tpu.pipeline_mode<synchronous>, transform_indices = @transform_2, window_bounds = array<i64: 1, 96>}, {transform_indices = @transform_3, window_bounds = array<i64: 16, 32>}, {transform_indices = @transform_4, window_bounds = array<i64: 16, 32>}, {transform_indices = @transform_5, window_bounds = array<i64: 16, 32>}]} {
    %c0 = arith.constant 0 : index
    %c0_0 = arith.constant 0 : index
    %0 = vector.load %arg1[%c0, %c0_0] : memref<16x32xf32, #tpu.memory_space<vmem>>, vector<16x32xf32>
    %c0_1 = arith.constant 0 : index
    %c0_2 = arith.constant 0 : index
    %1 = vector.load %arg2[%c0_1, %c0_2] : memref<96x32xf32, #tpu.memory_space<vmem>>, vector<32x32xf32>
    %c0_3 = arith.constant 0 : index
    %c0_4 = arith.constant 0 : index
    %2 = vector.load %arg3[%c0_3, %c0_4] : memref<1x96xf32, #tpu.memory_space<vmem>>, vector<1x32xf32>
    %cst = arith.constant dense<0.000000e+00> : vector<16x32xf32>
    %3 = tpu.matmul %0, %1, %cst {dimension_numbers = #tpu.dot_dimension_numbers<[1], [1], [0], [0], [0, 0, 1, 0], [], []>} : vector<16x32xf32>, vector<32x32xf32>, vector<16x32xf32> -> vector<16x32xf32>
    %4 = vector.broadcast %2 : vector<1x32xf32> to vector<16x32xf32>
    %5 = arith.addf %3, %4 : vector<16x32xf32>
    %c0_5 = arith.constant 0 : index
    %c0_6 = arith.constant 0 : index
    %6 = vector.load %arg4[%c0_5, %c0_6] : memref<16x32xf32, #tpu.memory_space<vmem>>, vector<16x32xf32>
    tpu.vector_store %arg4[%c0_5, %c0_6], %5 {strides = array<i32>} : memref<16x32xf32, #tpu.memory_space<vmem>>, vector<16x32xf32>,
    %c32 = arith.constant 32 : index
    %c0_7 = arith.constant 0 : index
    %7 = vector.load %arg2[%c32, %c0_7] : memref<96x32xf32, #tpu.memory_space<vmem>>, vector<32x32xf32>
    %c0_8 = arith.constant 0 : index
    %c32_9 = arith.constant 32 : index
    %8 = vector.load %arg3[%c0_8, %c32_9] : memref<1x96xf32, #tpu.memory_space<vmem>>, vector<1x32xf32>
    %cst_10 = arith.constant dense<0.000000e+00> : vector<16x32xf32>
    %9 = tpu.matmul %0, %7, %cst_10 {dimension_numbers = #tpu.dot_dimension_numbers<[1], [1], [0], [0], [0, 0, 1, 0], [], []>} : vector<16x32xf32>, vector<32x32xf32>, vector<16x32xf32> -> vector<16x32xf32>
    %10 = vector.broadcast %8 : vector<1x32xf32> to vector<16x32xf32>
    %11 = arith.addf %9, %10 : vector<16x32xf32>
    %c0_11 = arith.constant 0 : index
    %c0_12 = arith.constant 0 : index
    %12 = vector.load %arg5[%c0_11, %c0_12] : memref<16x32xf32, #tpu.memory_space<vmem>>, vector<16x32xf32>
    tpu.vector_store %arg5[%c0_11, %c0_12], %11 {strides = array<i32>} : memref<16x32xf32, #tpu.memory_space<vmem>>, vector<16x32xf32>,
    %c64 = arith.constant 64 : index
    %c0_13 = arith.constant 0 : index
    %13 = vector.load %arg2[%c64, %c0_13] : memref<96x32xf32, #tpu.memory_space<vmem>>, vector<32x32xf32>
    %c0_14 = arith.constant 0 : index
    %c64_15 = arith.constant 64 : index
    %14 = vector.load %arg3[%c0_14, %c64_15] : memref<1x96xf32, #tpu.memory_space<vmem>>, vector<1x32xf32>
    %cst_16 = arith.constant dense<0.000000e+00> : vector<16x32xf32>
    %15 = tpu.matmul %0, %13, %cst_16 {dimension_numbers = #tpu.dot_dimension_numbers<[1], [1], [0], [0], [0, 0, 1, 0], [], []>} : vector<16x32xf32>, vector<32x32xf32>, vector<16x32xf32> -> vector<16x32xf32>
    %16 = vector.broadcast %14 : vector<1x32xf32> to vector<16x32xf32>
    %17 = arith.addf %15, %16 : vector<16x32xf32>
    %c0_17 = arith.constant 0 : index
    %c0_18 = arith.constant 0 : index
    %18 = vector.load %arg6[%c0_17, %c0_18] : memref<16x32xf32, #tpu.memory_space<vmem>>, vector<16x32xf32>
    tpu.vector_store %arg6[%c0_17, %c0_18], %17 {strides = array<i32>} : memref<16x32xf32, #tpu.memory_space<vmem>>, vector<16x32xf32>,
    return
  }
  func.func @transform_0(%arg0: i32) -> (i32, i32) {
    %c0_i32 = arith.constant 0 : i32
    %c0_i32_0 = arith.constant 0 : i32
    return %arg0, %c0_i32 : i32, i32
  }
  func.func @transform_1(%arg0: i32) -> (i32, i32) {
    %c0_i32 = arith.constant 0 : i32
    %c0_i32_0 = arith.constant 0 : i32
    %c0_i32_1 = arith.constant 0 : i32
    return %c0_i32, %c0_i32_0 : i32, i32
  }
  func.func @transform_2(%arg0: i32) -> (i32, i32) {
    %c0_i32 = arith.constant 0 : i32
    %c0_i32_0 = arith.constant 0 : i32
    %c0_i32_1 = arith.constant 0 : i32
    return %c0_i32, %c0_i32_0 : i32, i32
  }
  func.func @transform_3(%arg0: i32) -> (i32, i32) {
    %c0_i32 = arith.constant 0 : i32
    %c0_i32_0 = arith.constant 0 : i32
    return %arg0, %c0_i32 : i32, i32
  }
  func.func @transform_4(%arg0: i32) -> (i32, i32) {
    %c0_i32 = arith.constant 0 : i32
    %c0_i32_0 = arith.constant 0 : i32
    return %arg0, %c0_i32 : i32, i32
  }
  func.func @transform_5(%arg0: i32) -> (i32, i32) {
    %c0_i32 = arith.constant 0 : i32
    %c0_i32_0 = arith.constant 0 : i32
    return %arg0, %c0_i32 : i32, i32
  }
}

</mosaic_0001>

<bundles_post_ra>
// kernel: tpu_custom_call.1
= control target key start
LH: loop header
LB: loop body
LE: loop exit
PB: predicated region body
PF: predicated region fallthrough
CT: control target
= control target key end

     0   :  { %11 = vsyncpa [#allocation3], 0  ;;  %vm29_vm0 = vcmask 261120   ;;  %s453_s0 = inlined_call_operand.vmem [shape: f32[16,32], index: 0, kind: input, shape index: {}]   ;;  %s454_s1 = inlined_call_operand.vmem [shape: f32[96,32], index: 1, kind: input, shape index: {}]   ;;  %s455_s2 = inlined_call_operand.vmem [shape: f32[1,96], index: 2, kind: input, shape index: {}]   ;;  %s456_s3 = inlined_call_operand.hbm [shape: f32[16,32], index: 3, kind: output, shape index: {0}]   ;;  %s457_s4 = inlined_call_operand.hbm [shape: f32[16,32], index: 4, kind: output, shape index: {1}]   ;;  %s458_s5 = inlined_call_operand.hbm [shape: f32[16,32], index: 5, kind: output, shape index: {2}]  }
   0x1   :  { %v76_v0 = vld [vmem:[%s454_s1 + $0x38] sm:$0xff]  ;;  %v75_v3 = vld [vmem:[%s454_s1 + $0x30] sm:$0xff]  ;;  %v74_v6 = vld [vmem:[%s454_s1 + $0x28] sm:$0xff] }
   0x2   :  { %v123_v1 = vld [vmem:[%s454_s1 + $0x58] sm:$0xff]  ;;  %226 = vmatpush.xpose.msk.msra.mxu1 %vm29_vm0, %v76_v0  ;;  %v122_v4 = vld [vmem:[%s454_s1 + $0x50] sm:$0xff]  ;;  %v249_v7 = vld [vmem:[%s455_s2] ss:$0 sm:$0xff] }
   0x3   :  { %232 = vmatpush.xpose.msk.msra.mxu2 %vm29_vm0, %v123_v1  ;;  %v24_v2 = vld [vmem:[%s454_s1 + $0x18] sm:$0xff]  ;;  %v23_v5 = vld [vmem:[%s454_s1 + $0x10] sm:$0xff]  ;;  %v121_v8 = vld [vmem:[%s454_s1 + $0x48] sm:$0xff] }
   0x4   :  { %238 = vmatpush.xpose.msk.msra.mxu3 %vm29_vm0, %v24_v2  ;;  %220 = vmatpush.xpose.msk.msra.mxu0 %vm29_vm0, %v24_v2 }
   0x6   :  { %227 = vmatpush.xpose.msk.msra.mxu1 %vm29_vm0, %v75_v3 }
   0x7   :  { %233 = vmatpush.xpose.msk.msra.mxu2 %vm29_vm0, %v122_v4 }
   0x8   :  { %239 = vmatpush.xpose.msk.msra.mxu3 %vm29_vm0, %v23_v5  ;;  %221 = vmatpush.xpose.msk.msra.mxu0 %vm29_vm0, %v23_v5 }
   0x9   :  { %12 = vsyncpa [#allocation5], 0  ;;  %v22_v9 = vld [vmem:[%s454_s1 + $0x8] sm:$0xff]  ;;  %s328_s13 = smov 96   ;;  %v73_v10 = vld [vmem:[%s454_s1 + $0x20] sm:$0xff]  ;;  %s331_s29 = smov [#allocation2]  }
   0xa   :  { %80 = vrot.lane.b32.xlu0 %v249_v7, %s328_s13  ;;  %228 = vmatpush.xpose.msk.msra.mxu1 %vm29_vm0, %v74_v6  ;;  %v120_v11 = vld [vmem:[%s454_s1 + $0x40] sm:$0xff]  ;;  %v20_v15 = vld [vmem:[%s453_s0 + $0x8] sm:$0xff]  ;;  %s171_s30 = sshll.u32 %s331_s29, 4  ;;  %s173_s8 = sshll.u32 %s456_s3, 4  ;;  %s172_s30 = int_to_ptr.vmem [resolvable:$true] %s171_s30  ;;  %s174_s8 = int_to_ptr.hbm [resolvable:$true] %s173_s8 }
   0xb   :  { %234 = vmatpush.xpose.msk.msra.mxu2 %vm29_vm0, %v121_v8  ;;  %v21_v12 = vld [vmem:[%s454_s1] sm:$0xff]  ;;  %s329_s1 = smov 64   ;;  %s186_s10 = sshll.u32 %s457_s4, 4  ;;  %s187_s10 = int_to_ptr.hbm [resolvable:$true] %s186_s10 }
   0xc   :  { %240 = vmatpush.xpose.msk.msra.mxu3 %vm29_vm0, %v22_v9  ;;  %222 = vmatpush.xpose.msk.msra.mxu0 %vm29_vm0, %v22_v9  ;;  %v250_v13 = vld [vmem:[%s455_s2] ss:$0 sm:$0xff]  ;;  %s332_s11 = smov [#allocation6]   ;;  %s199_s14 = sshll.u32 %s458_s5, 4  ;;  %s200_s14 = int_to_ptr.hbm [resolvable:$true] %s199_s14 }
   0xd   :  { %v19_v14 = vld [vmem:[%s453_s0] sm:$0xff]  ;;  %s330_s0 = smov [#allocation4]   ;;  %s197_s3 = sshll.u32 %s332_s11, 4  ;;  %s198_s3 = int_to_ptr.vmem [resolvable:$true] %s197_s3 }
   0xe   :  { %229 = vmatpush.xpose.msk.msra.mxu1 %vm29_vm0, %v73_v10  ;;  %v251_v17 = vld [vmem:[%s455_s2] ss:$0 sm:$0xff]  ;;  %s184_s28 = sshll.u32 %s330_s0, 4  ;;  %s333_s4 = smov 128   ;;  %s185_s28 = int_to_ptr.vmem [resolvable:$true] %s184_s28 }
   0xf   :  { %235 = vmatpush.xpose.msk.msra.mxu2 %vm29_vm0, %v120_v11  ;;  %s334_s15 = smov 8  }
  0x10   :  { %241 = vmatpush.xpose.msk.msra.mxu3 %vm29_vm0, %v21_v12  ;;  %223 = vmatpush.xpose.msk.msra.mxu0 %vm29_vm0, %v21_v12 }
  0x11   :  { %230 = vmatmul.msk.f32.vlgmr.msra.gmra.mxu1 %vm29_vm0, %v19_v14 }
  0x12   :  { %127 = vrot.lane.b32.xlu0 %v250_v13, %s329_s1  ;;  %236 = vmatmul.msk.f32.vlgmr.msra.gmra.mxu2 %vm29_vm0, %v19_v14 }
  0x13   :  { %225 = vmatmul.msk.f32.vlgmr.msra.gmra.mxu3 %vm29_vm0, %v20_v15  ;;  %224 = vmatmul.msk.f32.vlgmr.msra.gmra.mxu0 %vm29_vm0, %v19_v14 }
  0x19   :  { %231 = vmatmul.msk.f32.gmra.mxu1 %vm29_vm0, %v20_v15 }
  0x1a   :  { %237 = vmatmul.msk.f32.gmra.mxu2 %vm29_vm0, %v20_v15 }
  0x7c   :  { %v81_v16 = vpop.permute.xlu0 %80 }
  0x84   :  { %v128_v22 = vpop.permute.xlu0 %127 }
  0x8e   :  { %v112_v18 = vpop.f32.mrf.mxu1 }
  0x8f   :  { %v113_v19 = vadd.f32 %v112_v18, %v81_v16 }
  0x90   :  { %v65_v20 = vpop.f32.mrf.mxu0 }
  0x91   :  { %v66_v21 = vadd.f32 %v251_v17, %v65_v20  ;;  %118 = vst.msk [vmem:[#allocation4] sm:$0xff] %vm29_vm0, %v113_v19 }
  0x93   :  { %71 = vst.msk [vmem:[#allocation2] sm:$0xff] %vm29_vm0, %v66_v21 }
  0x95   :  { %v159_v23 = vpop.f32.mrf.mxu2 }
  0x96   :  { %v160_v24 = vadd.f32 %v159_v23, %v128_v22  ;;  %v68_v25 = vpop.f32.mrf.mxu3  ;;  %v115_v26 = vpop.f32.mrf.mxu1 }
  0x97   :  { %v69_v27 = vadd.f32 %v251_v17, %v68_v25  ;;  %v116_v28 = vadd.f32 %v115_v26, %v81_v16 }
  0x98   :  { %165 = vst.msk [vmem:[#allocation6] sm:$0xff] %vm29_vm0, %v160_v24 }
  0x99   :  { %72 = vst.msk [vmem:[#allocation2 + $0x8] sm:$0xff] %vm29_vm0, %v69_v27 }
  0x9a   :  { %119 = vst.msk [vmem:[#allocation4 + $0x8] sm:$0xff] %vm29_vm0, %v116_v28  ;;  %179 = dma.vmem_to_hbm [thread:$0]  %s172_s30, 256, %s174_s8, [#allocation3], %s333_s4, %s333_s4, %s334_s15  }
  0x9b   :  { %192 = dma.vmem_to_hbm [thread:$0]  %s185_s28, 256, %s187_s10, [#allocation5], %s333_s4, %s333_s4, %s334_s15  }
  0x9d   :  { %v162_v29 = vpop.f32.mrf.mxu2 }
  0x9e   :  { %v163_v30 = vadd.f32 %v162_v29, %v128_v22 }
  0xa0   :  { %166 = vst.msk [vmem:[#allocation6 + $0x8] sm:$0xff] %vm29_vm0, %v163_v30 }
  0xa1   :  { %205 = dma.vmem_to_hbm [thread:$0]  %s198_s3, 256, %s200_s14, [#allocation5], %s333_s4, %s333_s4, %s334_s15  }
  0xa2   :  { %324 = dma.done.wait [#allocation3], 256  }
  0xa3   :  { %325 = vsyncadd [#allocation3], 4294967040 }
  0xa4   :  { %326 = dma.done.wait [#allocation5], 512  }
  0xa5   :  { %327 = vsyncadd [#allocation5], 4294966784 }
  0xa6   :  { %218 = vsyncpa [#allocation3], 1 }
  0xa7   :  { %219 = vsyncpa [#allocation5], 1 }

</bundles_post_ra>
